<compile_context>
chip_gen: v5e
topology: v5e:2x2
jax: 0.10.0
libtpu: 0.0.40
codegen_flags: <defaults>
</compile_context>

<pallas_src>
import functools

import jax
import jax.numpy as jnp
import numpy as np
from jax.experimental import pallas as pl
from jax.experimental.pallas import tpu as pltpu


# ----------------------------- Pallas kernel ------------------------------ #

def _fused_mlp_kernel(*refs, n_layers):
    """Fused variable-length MLP over one lane tile.

    refs = (x_ref, w0_ref, b0_ref, w1_ref, b1_ref, ..., o_ref)
      x_ref : (L_in0, lane_tile)   activations, batch folded into lanes
      wI_ref: (lout_I, lin_I)      pre-sliced weight
      bI_ref: (lout_I, 1)          pre-sliced bias (broadcasts over lanes)
      o_ref : (outsize, lane_tile)
    """
    x_ref = refs[0]
    o_ref = refs[1 + 2 * n_layers]

    y = x_ref[...]                                     # (L_in0, lane_tile)
    for i in range(n_layers):
        w = refs[1 + 2 * i][...]                       # (lout, lin)
        b = refs[2 + 2 * i][...]                       # (lout, 1)
        # One MXU matmul per layer per step; bias broadcast over lanes once.
        y = jnp.dot(w, y, preferred_element_type=jnp.float32) + b
        if i < n_layers - 1:
            # activation (ReLU); dropout p=0 (eval) -> identity.
            y = jnp.maximum(y, 0.0)
            # TODO(synk): fused layernorm path if layernorm=True is ever needed.
    o_ref[...] = y.astype(o_ref.dtype)


def _pick_lane_tile(n_lanes, n_rows, elem_bytes=4):
    """Lane columns per grid step for the folded (rows, B*D) activation.

    Targets a ~2 MiB input block per step (measured: >=512-wide tiles reach
    ~85% of HBM roofline; tiny tiles are pure ~0.35us/step overhead), keeping
    the tile a multiple of 128 lanes that divides n_lanes so every store is a
    full unmasked vst.  Small / unaligned problems use a single full block.
    """
    if n_lanes % 128 != 0 or n_lanes <= 2048:
        return n_lanes
    target_bytes = 2 * 1024 * 1024
    want = (target_bytes // (n_rows * elem_bytes)) // 128 * 128
    want = int(max(128, min(want, n_lanes)))
    for tile in range(want, 127, -128):
        if n_lanes % tile == 0:
            return tile
    return n_lanes


# ------------------------------ module glue ------------------------------- #

def init_varlen_mlp_down(key, max_size, outsize, layers_sizes):
    """Deterministic param init mirroring torch.nn.Linear's U(+-1/sqrt(fan_in))."""
    sizes = [1.0] + list(layers_sizes)
    n_nodes = [max(int(max_size * s), outsize) for s in sizes]
    dims = [(n_nodes[i], n_nodes[i + 1]) for i in range(len(sizes) - 1)]
    dims.append((n_nodes[-1], outsize))
    weights, biases = [], []
    for (fan_in, fan_out) in dims:
        key, kw, kb = jax.random.split(key, 3)
        bound = 1.0 / np.sqrt(fan_in)
        weights.append(jax.random.uniform(
            kw, (fan_out, fan_in), jnp.float32, -bound, bound))
        biases.append(jax.random.uniform(
            kb, (fan_out,), jnp.float32, -bound, bound))
    return weights, biases


def varlen_mlp_down_forward(x, weights, biases, layers_sizes, outsize,
                            dropout_p=0.0, layernorm=False):
    """x: (B, L, D) float32 -> (B, outsize, D) float32 (matches PyTorch)."""
    assert dropout_p == 0.0, "TODO(synk): training-mode dropout not implemented"
    assert not layernorm, "TODO(synk): layernorm=True path not implemented"

    B, L, D = x.shape
    sizes = [1.0] + list(layers_sizes)
    n_layers = len(weights)

    # Static per-layer (in_size, out_size) exactly as the PyTorch forward.
    layer_dims = []
    for i in range(n_layers):
        in_size = int(L * sizes[i])
        if i > 0:
            in_size = max(outsize, in_size)
        if i < n_layers - 1:
            out_size = max(outsize, int(L * sizes[i + 1]))
        else:
            out_size = weights[i].shape[0]             # full rows == outsize
        fan_out, fan_in = weights[i].shape
        assert in_size <= fan_in and out_size <= fan_out, (
            f"layer {i}: sliced dims ({out_size},{in_size}) exceed stored "
            f"weight shape {weights[i].shape}; require L <= max_size")
        layer_dims.append((in_size, out_size))
    assert layer_dims[0][0] == L
    for i in range(1, n_layers):
        assert layer_dims[i][0] == layer_dims[i - 1][1]
    final_out = layer_dims[-1][1]

    # Fold batch into the lane axis: (B, L, D) -> (L, B*D), lane-dense.
    n_lanes = B * D
    x2 = jnp.transpose(x, (1, 0, 2)).reshape(L, n_lanes)

    # Pre-slice weights/biases to their exact shapes once, wrapper-side.
    wb_args, wb_specs = [], []
    flops, wb_bytes = 0, 0
    for i, (lin, lout) in enumerate(layer_dims):
        w_sl = weights[i][:lout, :lin].astype(jnp.float32)
        b_sl = biases[i][:lout].astype(jnp.float32).reshape(lout, 1)
        wb_args += [w_sl, b_sl]
        wb_specs += [pl.BlockSpec((lout, lin), lambda g: (0, 0)),
                     pl.BlockSpec((lout, 1), lambda g: (0, 0))]
        flops += 2 * lout * lin * n_lanes
        wb_bytes += (lout * lin + lout) * 4

    lane_tile = _pick_lane_tile(n_lanes, L)
    grid = (n_lanes // lane_tile,)

    kernel = functools.partial(_fused_mlp_kernel, n_layers=n_layers)

    out2 = pl.pallas_call(
        kernel,
        out_shape=jax.ShapeDtypeStruct((final_out, n_lanes), x.dtype),
        grid=grid,
        in_specs=[pl.BlockSpec((L, lane_tile), lambda g: (0, g))] + wb_specs,
        out_specs=pl.BlockSpec((final_out, lane_tile), lambda g: (0, g)),
        compiler_params=pltpu.CompilerParams(
            dimension_semantics=("parallel",),
            # ~2 MiB double-buffered blocks: 32 MiB leaves ample headroom even
            # on v7x (64 MiB physical); v5e/v6e could raise this for huge tiles.
            vmem_limit_bytes=32 * 1024 * 1024),
        cost_estimate=pl.CostEstimate(
            flops=flops, transcendentals=0,
            bytes_accessed=(L * n_lanes + final_out * n_lanes) * 4 + wb_bytes),
    )(x2, *wb_args)

    # Unfold lanes back to (B, outsize, D) -- layout plumbing only.
    return out2.reshape(final_out, B, D).transpose(1, 0, 2)


def varlen_mlp_down_reference(x, weights, biases, layers_sizes, outsize):
    """Pure-JAX reference replicating the PyTorch forward exactly."""
    B, L, D = x.shape
    sizes = [1.0] + list(layers_sizes)
    n_layers = len(weights)
    y = x
    for i in range(n_layers):
        in_size = int(L * sizes[i])
        if i > 0:
            in_size = max(outsize, in_size)
        if i < n_layers - 1:
            out_size = max(outsize, int(L * sizes[i + 1]))
        else:
            out_size = weights[i].shape[0]
        w_sl = weights[i][:out_size, :in_size]
        b_sl = biases[i][:out_size]
        yt = jnp.transpose(y, (0, 2, 1))                    # (B, D, L_in)
        yt = jnp.einsum("bdl,ol->bdo", yt, w_sl) + b_sl     # (B, D, L_out)
        y = jnp.transpose(yt, (0, 2, 1))                    # (B, L_out, D)
        if i < n_layers - 1:
            y = jnp.maximum(y, 0.0)
    return y


# --------------------------------- main ----------------------------------- #

if __name__ == "__main__":
    # Module config: max_size=32, outsize=8, layers_sizes=[0.5], activation=ReLU
    max_size, outsize = 32, 8
    layers_sizes = [0.5]

    key = jax.random.PRNGKey(0)
    kx, kp = jax.random.split(key)
    B, L, D = 2, 24, 16                          # variable length L <= max_size
    x = jax.random.normal(kx, (B, L, D), jnp.float32)

    weights, biases = init_varlen_mlp_down(kp, max_size, outsize, layers_sizes)

    out = varlen_mlp_down_forward(x, weights, biases, layers_sizes, outsize)
    out = jax.block_until_ready(out)

    ref = varlen_mlp_down_reference(x, weights, biases, layers_sizes, outsize)
    np.testing.assert_allclose(np.asarray(out), np.asarray(ref),
                               rtol=1e-5, atol=1e-5)
    assert out.shape == (B, outsize, D)
    print("KERNEL_OK")
</pallas_src>

<mosaic_0001>
module attributes {stable_mosaic.version = 11 : i64} {
  func.func @_fused_mlp_kernel(%arg0: i32, %arg1: memref<24x32xf32, #tpu.memory_space<vmem>>, %arg2: memref<12x24xf32, #tpu.memory_space<vmem>>, %arg3: memref<12x1xf32, #tpu.memory_space<vmem>>, %arg4: memref<8x12xf32, #tpu.memory_space<vmem>>, %arg5: memref<8x1xf32, #tpu.memory_space<vmem>>, %arg6: memref<8x32xf32, #tpu.memory_space<vmem>>) attributes {dimension_semantics = [#tpu.dimension_semantics<parallel>], iteration_bounds = array<i64: 1>, scalar_prefetch = 0 : i64, scratch_operands = 0 : i64, tpu.core_type = #tpu.core_type<tc>, window_params = [{transform_indices = @transform_0, window_bounds = array<i64: 24, 32>}, {pipeline_mode = #tpu.pipeline_mode<synchronous>, transform_indices = @transform_1, window_bounds = array<i64: 12, 24>}, {pipeline_mode = #tpu.pipeline_mode<synchronous>, transform_indices = @transform_2, window_bounds = array<i64: 12, 1>}, {pipeline_mode = #tpu.pipeline_mode<synchronous>, transform_indices = @transform_3, window_bounds = array<i64: 8, 12>}, {pipeline_mode = #tpu.pipeline_mode<synchronous>, transform_indices = @transform_4, window_bounds = array<i64: 8, 1>}, {transform_indices = @transform_5, window_bounds = array<i64: 8, 32>}]} {
    %c0 = arith.constant 0 : index
    %c0_0 = arith.constant 0 : index
    %0 = vector.load %arg1[%c0, %c0_0] : memref<24x32xf32, #tpu.memory_space<vmem>>, vector<24x32xf32>
    %c0_1 = arith.constant 0 : index
    %c0_2 = arith.constant 0 : index
    %1 = vector.load %arg2[%c0_1, %c0_2] : memref<12x24xf32, #tpu.memory_space<vmem>>, vector<12x24xf32>
    %c0_3 = arith.constant 0 : index
    %c0_4 = arith.constant 0 : index
    %2 = vector.load %arg3[%c0_3, %c0_4] : memref<12x1xf32, #tpu.memory_space<vmem>>, vector<12x1xf32>
    %cst = arith.constant dense<0.000000e+00> : vector<12x32xf32>
    %3 = tpu.matmul %1, %0, %cst {dimension_numbers = #tpu.dot_dimension_numbers<[1], [0], [0], [1], [0, 0, 1, 1], [], []>} : vector<12x24xf32>, vector<24x32xf32>, vector<12x32xf32> -> vector<12x32xf32>
    %4 = vector.broadcast %2 : vector<12x1xf32> to vector<12x32xf32>
    %5 = arith.addf %3, %4 : vector<12x32xf32>
    %cst_5 = arith.constant 0.000000e+00 : f32
    %6 = vector.broadcast %cst_5 : f32 to vector<12x32xf32>
    %7 = arith.maximumf %5, %6 : vector<12x32xf32>
    %c0_6 = arith.constant 0 : index
    %c0_7 = arith.constant 0 : index
    %8 = vector.load %arg4[%c0_6, %c0_7] : memref<8x12xf32, #tpu.memory_space<vmem>>, vector<8x12xf32>
    %c0_8 = arith.constant 0 : index
    %c0_9 = arith.constant 0 : index
    %9 = vector.load %arg5[%c0_8, %c0_9] : memref<8x1xf32, #tpu.memory_space<vmem>>, vector<8x1xf32>
    %cst_10 = arith.constant dense<0.000000e+00> : vector<8x32xf32>
    %10 = tpu.matmul %8, %7, %cst_10 {dimension_numbers = #tpu.dot_dimension_numbers<[1], [0], [0], [1], [0, 0, 1, 1], [], []>} : vector<8x12xf32>, vector<12x32xf32>, vector<8x32xf32> -> vector<8x32xf32>
    %11 = vector.broadcast %9 : vector<8x1xf32> to vector<8x32xf32>
    %12 = arith.addf %10, %11 : vector<8x32xf32>
    %c0_11 = arith.constant 0 : index
    %c0_12 = arith.constant 0 : index
    %13 = vector.load %arg6[%c0_11, %c0_12] : memref<8x32xf32, #tpu.memory_space<vmem>>, vector<8x32xf32>
    tpu.vector_store %arg6[%c0_11, %c0_12], %12 {strides = array<i32>} : memref<8x32xf32, #tpu.memory_space<vmem>>, vector<8x32xf32>,
    return
  }
  func.func @transform_0(%arg0: i32) -> (i32, i32) {
    %c0_i32 = arith.constant 0 : i32
    %c0_i32_0 = arith.constant 0 : i32
    return %c0_i32, %arg0 : i32, i32
  }
  func.func @transform_1(%arg0: i32) -> (i32, i32) {
    %c0_i32 = arith.constant 0 : i32
    %c0_i32_0 = arith.constant 0 : i32
    %c0_i32_1 = arith.constant 0 : i32
    return %c0_i32, %c0_i32_0 : i32, i32
  }
  func.func @transform_2(%arg0: i32) -> (i32, i32) {
    %c0_i32 = arith.constant 0 : i32
    %c0_i32_0 = arith.constant 0 : i32
    %c0_i32_1 = arith.constant 0 : i32
    return %c0_i32, %c0_i32_0 : i32, i32
  }
  func.func @transform_3(%arg0: i32) -> (i32, i32) {
    %c0_i32 = arith.constant 0 : i32
    %c0_i32_0 = arith.constant 0 : i32
    %c0_i32_1 = arith.constant 0 : i32
    return %c0_i32, %c0_i32_0 : i32, i32
  }
  func.func @transform_4(%arg0: i32) -> (i32, i32) {
    %c0_i32 = arith.constant 0 : i32
    %c0_i32_0 = arith.constant 0 : i32
    %c0_i32_1 = arith.constant 0 : i32
    return %c0_i32, %c0_i32_0 : i32, i32
  }
  func.func @transform_5(%arg0: i32) -> (i32, i32) {
    %c0_i32 = arith.constant 0 : i32
    %c0_i32_0 = arith.constant 0 : i32
    return %c0_i32, %arg0 : i32, i32
  }
}

</mosaic_0001>

<bundles_post_ra>
// kernel: tpu_custom_call.1
= control target key start
LH: loop header
LB: loop body
LE: loop exit
PB: predicated region body
PF: predicated region fallthrough
CT: control target
= control target key end

     0   :  { %10 = vsyncpa [#allocation3], 0  ;;  %s311_s0 = inlined_call_operand.vmem [shape: f32[24,32], index: 0, kind: input, shape index: {}]   ;;  %s312_s1 = inlined_call_operand.hbm [shape: f32[12,24], index: 1, kind: input, shape index: {}]   ;;  %s313_s2 = inlined_call_operand.vmem [shape: f32[12,1], index: 2, kind: input, shape index: {}]   ;;  %s314_s3 = inlined_call_operand.hbm [shape: f32[8,12], index: 3, kind: input, shape index: {}]   ;;  %s315_s4 = inlined_call_operand.vmem [shape: f32[8,1], index: 4, kind: input, shape index: {}]   ;;  %s316_s5 = inlined_call_operand.hbm [shape: f32[8,32], index: 5, kind: output, shape index: {}]  }
   0x1   :  { %11 = vsyncpa [#allocation6], 0 }
   0x2   :  { %12 = vsyncpa [#allocation4], 0  ;;  %s19_s20 = sshll.u32 %s312_s1, 4  ;;  %s248_s21 = smov [#allocation2]   ;;  %s20_s20 = int_to_ptr.hbm [resolvable:$true] %s19_s20 }
   0x3   :  { %s21_s22 = sshll.u32 %s248_s21, 4  ;;  %s35_s25 = sshll.u32 %s314_s3, 4  ;;  %s22_s22 = int_to_ptr.vmem [resolvable:$true] %s21_s22  ;;  %s36_s25 = int_to_ptr.hbm [resolvable:$true] %s35_s25 }
   0x4   :  { %s249_s26 = smov 128   ;;  %s250_s27 = smov 8  }
   0x5   :  { %27 = dma.hbm_to_vmem [thread:$0]  %s20_s20, 256, %s22_s22, [#allocation3], %s249_s26, %s249_s26, %s250_s27  }
   0x6   :  { %s251_s28 = smov [#allocation5]  }
   0x7   :  { %s37_s29 = sshll.u32 %s251_s28, 4  ;;  %s38_s29 = int_to_ptr.vmem [resolvable:$true] %s37_s29 }
   0x8   :  { %40 = dma.hbm_to_vmem [thread:$0]  %s36_s25, 128, %s38_s29, [#allocation6]  }
   0x9   :  { %242 = dma.done.wait [#allocation3], 256  }
   0xa   :  { %243 = vsyncadd [#allocation3], 4294967040 }
   0xb   :  { %244 = dma.done.wait [#allocation6], 128  }
   0xc   :  { %245 = vsyncadd [#allocation6], 4294967168  ;;  %v252_v0 = vmov 0   ;;  %v53_v1 = vld [vmem:[%s311_s0 + $0x10] sm:$0xff]  ;;  %v52_v2 = vld [vmem:[%s311_s0 + $0x8] sm:$0xff]  ;;  %vm68_vm0 = vcmask 195584  }
   0xd   :  { %168 = vset.pattern.permute.xlu0 %v252_v0  ;;  %169 = vset.pattern.permute.xlu1 %v252_v0  ;;  %v57_v3 = vld [vmem:[%s313_s2 + $0x8] sm:$0xf]  ;;  %v51_v4 = vld [vmem:[%s311_s0] sm:$0xff]  ;;  %vm111_vm1 = vcmask 1043456   ;;  %v100_v17 = vld [vmem:[#allocation5] sm:$0xff]  ;;  %vm107_vm2 = vcmask 97280  }
   0xe   :  { %88 = vmatpush.msra.mxu0 %v53_v1  ;;  %159 = vmatpush.msra.mxu2 %v53_v1  ;;  %v54_v5 = vld [vmem:[#allocation2] sm:$0xff]  ;;  %v55_v6 = vld [vmem:[#allocation2 + $0x8] sm:$0xf]  ;;  %s253_s0 = smov [#allocation7]   ;;  %s144_s16 = sshll.u32 %s316_s5, 4  ;;  %vm135_vm3 = vcmask 261120   ;;  %s145_s16 = int_to_ptr.hbm [resolvable:$true] %s144_s16 }
   0xf   :  { %65 = vperm.xlu0 %168, %v57_v3   ;;  %v56_v7 = vld [vmem:[%s313_s2] sm:$0xff]  ;;  %s142_s2 = sshll.u32 %s253_s0, 4  ;;  %s143_s2 = int_to_ptr.vmem [resolvable:$true] %s142_s2 }
  0x10   :  { %89 = vmatpush.msra.mxu0 %v52_v2  ;;  %160 = vmatpush.msra.mxu2 %v52_v2  ;;  %v101_v8 = vld [vmem:[%s315_s4] sm:$0xff] }
  0x11   :  { %104 = vperm.xlu1 %169, %v101_v8  }
  0x12   :  { %90 = vmatpush.msra.mxu0 %v51_v4  ;;  %161 = vmatpush.msra.mxu2 %v51_v4 }
  0x13   :  { %155 = vmatmul.msk.f32.vlgmr.msra.gmra.mxu0 %vm68_vm0, %v54_v5  ;;  %156 = vmatmul.msk.f32.vlgmr.msra.gmra.mxu2 %vm68_vm0, %v55_v6 }
  0x17   :  { %60 = vperm.xlu0 %168, %v56_v7  }
  0x81   :  { %v66_v9 = vpop.permute.xlu0 %65 }
  0x83   :  { %v105_v18 = vpop.permute.xlu1 %104 }
  0x89   :  { %v61_v10 = vpop.permute.xlu0 %60 }
  0x90   :  { %v92_v11 = vpop.f32.mrf.mxu0 }
  0x91   :  { %v93_v13 = vadd.f32 %v92_v11, %v61_v10 }
  0x93   :  { %v98_v16 = vmax.f32 %v93_v13, 0.0 }
  0x96   :  { %v95_v12 = vpop.f32.mrf.mxu2 }
  0x97   :  { %v96_v14 = vadd.f32 %v95_v12, %v66_v9 }
  0x99   :  { %v99_v15 = vmax.f32 %v96_v14, 0.0 }
  0x9b   :  { %157 = vmatpush.msk.msra.mxu1 %vm111_vm1, %v99_v15 }
  0x9d   :  { %130 = vmatpush.msra.mxu1 %v98_v16 }
  0x9e   :  { %158 = vmatmul.msk.f32.vlgmr.msra.gmra.mxu1 %vm107_vm2, %v100_v17 }
 0x11b   :  { %v132_v19 = vpop.f32.mrf.mxu1 }
 0x11c   :  { %v133_v20 = vadd.f32 %v132_v19, %v105_v18 }
 0x11e   :  { %136 = vst.msk [vmem:[#allocation7] sm:$0xff] %vm135_vm3, %v133_v20 }
 0x11f   :  { %147 = dma.vmem_to_hbm [thread:$0]  %s143_s2, 128, %s145_s16, [#allocation4]  }
 0x120   :  { %246 = dma.done.wait [#allocation4], 128  }
 0x121   :  { %247 = vsyncadd [#allocation4], 4294967168 }
 0x122   :  { %152 = vsyncpa [#allocation3], 1 }
 0x123   :  { %153 = vsyncpa [#allocation6], 1 }
 0x124   :  { %154 = vsyncpa [#allocation4], 1 }

</bundles_post_ra>
